<compile_context>
chip_gen: v7x
topology: tpu7x:2x2x1
jax: 0.10.0
libtpu: 0.0.40
codegen_flags: <defaults>
</compile_context>

<pallas_src>
import functools

import jax
import jax.numpy as jnp
from jax.experimental import pallas as pl
from jax.experimental.pallas import tpu as pltpu

BN_EPS = 1e-5
_NEG_BIG = -1e30


def _round_up(x, m):
    return (x + m - 1) // m * m


# --------------------------------------------------------------------------- #
# Kernel
# --------------------------------------------------------------------------- #
def _mlp_head_kernel(x_ref, w1_ref, b1_ref, w2_ref, b2_ref, w3_ref, b3_ref,
                     probs_ref, logits_ref, *, num_classes):
    # layer1: (BN-folded) Linear -> ReLU -> bf16 (Dropout == identity in eval).
    h1 = jnp.maximum(
        jnp.dot(x_ref[...], w1_ref[...], preferred_element_type=jnp.float32)
        + b1_ref[...], 0.0).astype(jnp.bfloat16)

    # layer2: (BN-folded) Linear -> ReLU -> bf16.
    h2 = jnp.maximum(
        jnp.dot(h1, w2_ref[...], preferred_element_type=jnp.float32)
        + b2_ref[...], 0.0).astype(jnp.bfloat16)

    # classification layer (lane-padded output dim, padded bias lanes = -1e30).
    logits = jnp.dot(h2, w3_ref[...],
                     preferred_element_type=jnp.float32) + b3_ref[...]
    logits_ref[...] = logits

    # head: sigmoid (C == 1) or softmax over dim=1.
    if num_classes == 1:
        probs_ref[...] = 1.0 / (1.0 + jnp.exp(-logits))
    else:
        m = jnp.max(logits, axis=1, keepdims=True)
        e = jnp.exp(logits - m)          # padded lanes (-1e30) underflow to 0
        s = jnp.sum(e, axis=1, keepdims=True)
        probs_ref[...] = e * pl.reciprocal(s, approx=True)


# --------------------------------------------------------------------------- #
# Parameter folding (eval-mode BN -> Linear) + lane padding of all dims
# --------------------------------------------------------------------------- #
def fold_params(params):
    """Fold eval-mode BN into the Linear layers and pad every dim to 128.

    Returns ((w1,b1,w2,b2,w3,b3), (Fp, H1p, H2p, Cp)) with bf16 weights and
    f32 biases.  Padded classifier bias lanes are -1e30 so softmax ignores
    them; all other padding is zero (ReLU(0)=0 feeds zero-padded weight rows).
    """
    (w1, b1, g1, be1, m1, v1,
     w2, b2, g2, be2, m2, v2,
     w3, b3) = params

    F, H1 = w1.shape
    H2 = w2.shape[1]
    C = w3.shape[1]
    Fp, H1p, H2p, Cp = (_round_up(d, 128) for d in (F, H1, H2, C))

    def fold(w, b, g, be, m, v):
        scale = g * jax.lax.rsqrt(v + BN_EPS)            # (1, out)
        return w * scale, (b - m) * scale + be           # f32

    w1f, b1f = fold(w1, b1, g1, be1, m1, v1)
    w2f, b2f = fold(w2, b2, g2, be2, m2, v2)

    def pad2(a, r, c):
        return jnp.zeros((r, c), jnp.float32).at[:a.shape[0], :a.shape[1]].set(a)

    w1p = pad2(w1f, Fp, H1p).astype(jnp.bfloat16)
    b1p = pad2(b1f, 1, H1p)
    w2p = pad2(w2f, H1p, H2p).astype(jnp.bfloat16)
    b2p = pad2(b2f, 1, H2p)
    w3p = pad2(w3, H2p, Cp).astype(jnp.bfloat16)
    b3p = jnp.full((1, Cp), _NEG_BIG, jnp.float32).at[:, :C].set(b3)
    return (w1p, b1p, w2p, b2p, w3p, b3p), (Fp, H1p, H2p, Cp)


def _const_spec(shape):
    """Constant-index (VMEM-resident) spec, single-buffered when supported."""
    idx = lambda i: (0, 0)
    try:
        return pl.BlockSpec(shape, idx, pipeline_mode=pl.Buffered(1))
    except TypeError:                       # older JAX without pipeline_mode
        return pl.BlockSpec(shape, idx)


# --------------------------------------------------------------------------- #
# Wrapper
# --------------------------------------------------------------------------- #
def multi_classification_head_flow(x, params, num_classes, block_b=512):
    """x: (B, input_size) float32.  Returns (probs, logits), both (B, num_classes)."""
    B, F = x.shape
    (w1p, b1p, w2p, b2p, w3p, b3p), (Fp, H1p, H2p, Cp) = fold_params(params)

    # Batch tile: multiple of 8; guarantee >= 2 grid steps when the batch allows
    # so the "parallel" grid axis can shard across the two TCs on v7x.
    tb = _round_up(min(block_b, B), 8)
    if B > 8 and _round_up(B, tb) // tb < 2:
        tb = _round_up(pl.cdiv(B, 2), 8)
    B_pad = _round_up(B, tb)
    grid = (B_pad // tb,)

    # Pad batch + feature dims, cast the streamed input to bf16 at the boundary.
    xp = jnp.zeros((B_pad, Fp), jnp.float32).at[:B, :F].set(x).astype(jnp.bfloat16)

    # Generation-aware VMEM budget (85% of physical capacity as the cap).
    try:
        vmem_cap = int(getattr(pltpu.get_tpu_info(), "vmem_capacity_bytes",
                               64 * 1024 * 1024))
    except Exception:
        vmem_cap = 64 * 1024 * 1024
    vmem_cap = max(int(0.85 * vmem_cap), 16 * 1024 * 1024)

    weight_bytes = ((w1p.size + w2p.size + w3p.size) * 2
                    + (b1p.size + b2p.size + b3p.size) * 4)
    step_io_bytes = tb * Fp * 2 + 2 * tb * Cp * 4          # bf16 in, 2x f32 out
    scratch_bytes = tb * (H1p + H2p) * 6                   # f32 acc + bf16 copy
    vmem_bytes = int(1.2 * (weight_bytes + 2 * step_io_bytes + scratch_bytes))
    vmem_bytes = min(max(vmem_bytes + (2 << 20), 16 * 1024 * 1024), vmem_cap)

    cost = pl.CostEstimate(
        flops=2 * B_pad * (Fp * H1p + H1p * H2p + H2p * Cp),
        transcendentals=B_pad * Cp,
        bytes_accessed=weight_bytes + B_pad * Fp * 2 + 2 * B_pad * Cp * 4,
    )

    kernel = functools.partial(_mlp_head_kernel, num_classes=num_classes)

    probs, logits = pl.pallas_call(
        kernel,
        out_shape=(
            jax.ShapeDtypeStruct((B_pad, Cp), jnp.float32),
            jax.ShapeDtypeStruct((B_pad, Cp), jnp.float32),
        ),
        grid=grid,
        in_specs=[
            pl.BlockSpec((tb, Fp), lambda i: (i, 0)),      # x: tiled over batch
            _const_spec((Fp, H1p)),                        # weights/biases resident,
            _const_spec((1, H1p)),                         # single-buffered
            _const_spec((H1p, H2p)),
            _const_spec((1, H2p)),
            _const_spec((H2p, Cp)),
            _const_spec((1, Cp)),
        ],
        out_specs=(
            pl.BlockSpec((tb, Cp), lambda i: (i, 0)),
            pl.BlockSpec((tb, Cp), lambda i: (i, 0)),
        ),
        compiler_params=pltpu.CompilerParams(
            dimension_semantics=("parallel",),
            vmem_limit_bytes=vmem_bytes,
        ),
        cost_estimate=cost,
    )(xp, w1p, b1p, w2p, b2p, w3p, b3p)

    return probs[:B, :num_classes], logits[:B, :num_classes]


# --------------------------------------------------------------------------- #
# Parameter init (PyTorch-style shapes, weights stored transposed (in, out))
# --------------------------------------------------------------------------- #
def init_params(key, input_size, num_classes):
    h1 = input_size
    h2 = input_size // 2
    ks = jax.random.split(key, 8)

    def linear(kw, kb, fan_in, fan_out):
        bound = 1.0 / jnp.sqrt(fan_in)
        w = jax.random.uniform(kw, (fan_in, fan_out), jnp.float32, -bound, bound)
        b = jax.random.uniform(kb, (1, fan_out), jnp.float32, -bound, bound)
        return w, b

    w1, b1 = linear(ks[0], ks[1], input_size, h1)
    w2, b2 = linear(ks[2], ks[3], h1, h2)
    w3, b3 = linear(ks[4], ks[5], h2, num_classes)

    def bn(k, dim):
        k1, k2, k3 = jax.random.split(k, 3)
        gamma = 1.0 + 0.1 * jax.random.normal(k1, (1, dim), jnp.float32)
        beta = 0.1 * jax.random.normal(k2, (1, dim), jnp.float32)
        mean = 0.05 * jax.random.normal(k3, (1, dim), jnp.float32)
        var = jnp.ones((1, dim), jnp.float32) * 0.9
        return gamma, beta, mean, var

    g1, be1, m1, v1 = bn(ks[6], h1)
    g2, be2, m2, v2 = bn(ks[7], h2)

    return (w1, b1, g1, be1, m1, v1,
            w2, b2, g2, be2, m2, v2,
            w3, b3)


# --------------------------------------------------------------------------- #
# Pure-JAX reference (un-folded, f32): eval-mode forward of the PyTorch module
# --------------------------------------------------------------------------- #
def reference(x, params, num_classes):
    (w1, b1, g1, be1, m1, v1,
     w2, b2, g2, be2, m2, v2,
     w3, b3) = params
    h = x @ w1 + b1
    h = (h - m1) / jnp.sqrt(v1 + BN_EPS) * g1 + be1
    h = jnp.maximum(h, 0.0)
    h = h @ w2 + b2
    h = (h - m2) / jnp.sqrt(v2 + BN_EPS) * g2 + be2
    h = jnp.maximum(h, 0.0)
    logits = h @ w3 + b3
    if num_classes == 1:
        probs = jax.nn.sigmoid(logits)
    else:
        probs = jax.nn.softmax(logits, axis=1)
    return probs, logits


if __name__ == "__main__":
    key = jax.random.PRNGKey(0)
    k_x, k_p = jax.random.split(key)

    batch = 40            # not a multiple of the tile -> exercises padding
    input_size = 32
    num_classes = 5

    x = jax.random.normal(k_x, (batch, input_size), jnp.float32)
    params = init_params(k_p, input_size, num_classes)

    # Small batch tile so the grid has several steps at toy sizes.
    probs, logits = multi_classification_head_flow(x, params, num_classes, block_b=16)
    probs = jax.block_until_ready(probs)
    logits = jax.block_until_ready(logits)

    ref_probs, ref_logits = reference(x, params, num_classes)
    assert probs.shape == (batch, num_classes)
    assert logits.shape == (batch, num_classes)
    # bf16 weights/inputs + approx reciprocal -> loosened tolerance vs f32 ref.
    assert jnp.allclose(logits, ref_logits, atol=2e-2, rtol=2e-2)
    assert jnp.allclose(probs, ref_probs, atol=2e-2, rtol=2e-2)
    assert jnp.allclose(jnp.sum(probs, axis=1), 1.0, atol=1e-2)

    print("KERNEL_OK")
</pallas_src>

<mosaic_0001>
module attributes {stable_mosaic.version = 11 : i64} {
  func.func @_mlp_head_kernel(%arg0: i32, %arg1: memref<16x128xbf16, #tpu.memory_space<vmem>>, %arg2: memref<128x128xbf16, #tpu.memory_space<vmem>>, %arg3: memref<1x128xf32, #tpu.memory_space<vmem>>, %arg4: memref<128x128xbf16, #tpu.memory_space<vmem>>, %arg5: memref<1x128xf32, #tpu.memory_space<vmem>>, %arg6: memref<128x128xbf16, #tpu.memory_space<vmem>>, %arg7: memref<1x128xf32, #tpu.memory_space<vmem>>, %arg8: memref<16x128xf32, #tpu.memory_space<vmem>>, %arg9: memref<16x128xf32, #tpu.memory_space<vmem>>) attributes {dimension_semantics = [#tpu.dimension_semantics<parallel>], iteration_bounds = array<i64: 3>, scalar_prefetch = 0 : i64, scratch_operands = 0 : i64, tpu.core_type = #tpu.core_type<tc>, window_params = [{transform_indices = @transform_0, window_bounds = array<i64: 16, 128>}, {pipeline_mode = #tpu.pipeline_mode<synchronous>, transform_indices = @transform_1, window_bounds = array<i64: 128, 128>}, {pipeline_mode = #tpu.pipeline_mode<synchronous>, transform_indices = @transform_2, window_bounds = array<i64: 1, 128>}, {pipeline_mode = #tpu.pipeline_mode<synchronous>, transform_indices = @transform_3, window_bounds = array<i64: 128, 128>}, {pipeline_mode = #tpu.pipeline_mode<synchronous>, transform_indices = @transform_4, window_bounds = array<i64: 1, 128>}, {pipeline_mode = #tpu.pipeline_mode<synchronous>, transform_indices = @transform_5, window_bounds = array<i64: 128, 128>}, {pipeline_mode = #tpu.pipeline_mode<synchronous>, transform_indices = @transform_6, window_bounds = array<i64: 1, 128>}, {transform_indices = @transform_7, window_bounds = array<i64: 16, 128>}, {transform_indices = @transform_8, window_bounds = array<i64: 16, 128>}]} {
    %c0 = arith.constant 0 : index
    %c0_0 = arith.constant 0 : index
    %0 = vector.load %arg1[%c0, %c0_0] : memref<16x128xbf16, #tpu.memory_space<vmem>>, vector<16x128xbf16>
    %c0_1 = arith.constant 0 : index
    %c0_2 = arith.constant 0 : index
    %1 = vector.load %arg2[%c0_1, %c0_2] : memref<128x128xbf16, #tpu.memory_space<vmem>>, vector<128x128xbf16>
    %cst = arith.constant dense<0.000000e+00> : vector<16x128xf32>
    %2 = tpu.matmul %0, %1, %cst {dimension_numbers = #tpu.dot_dimension_numbers<[1], [0], [0], [1], [0, 0, 1, 1], [], []>} : vector<16x128xbf16>, vector<128x128xbf16>, vector<16x128xf32> -> vector<16x128xf32>
    %c0_3 = arith.constant 0 : index
    %c0_4 = arith.constant 0 : index
    %3 = vector.load %arg3[%c0_3, %c0_4] : memref<1x128xf32, #tpu.memory_space<vmem>>, vector<1x128xf32>
    %4 = vector.broadcast %3 : vector<1x128xf32> to vector<16x128xf32>
    %5 = arith.addf %2, %4 : vector<16x128xf32>
    %cst_5 = arith.constant 0.000000e+00 : f32
    %6 = vector.broadcast %cst_5 : f32 to vector<16x128xf32>
    %7 = arith.maximumf %5, %6 : vector<16x128xf32>
    %8 = arith.truncf %7 : vector<16x128xf32> to vector<16x128xbf16>
    %c0_6 = arith.constant 0 : index
    %c0_7 = arith.constant 0 : index
    %9 = vector.load %arg4[%c0_6, %c0_7] : memref<128x128xbf16, #tpu.memory_space<vmem>>, vector<128x128xbf16>
    %cst_8 = arith.constant dense<0.000000e+00> : vector<16x128xf32>
    %10 = tpu.matmul %8, %9, %cst_8 {dimension_numbers = #tpu.dot_dimension_numbers<[1], [0], [0], [1], [0, 0, 1, 1], [], []>} : vector<16x128xbf16>, vector<128x128xbf16>, vector<16x128xf32> -> vector<16x128xf32>
    %c0_9 = arith.constant 0 : index
    %c0_10 = arith.constant 0 : index
    %11 = vector.load %arg5[%c0_9, %c0_10] : memref<1x128xf32, #tpu.memory_space<vmem>>, vector<1x128xf32>
    %12 = vector.broadcast %11 : vector<1x128xf32> to vector<16x128xf32>
    %13 = arith.addf %10, %12 : vector<16x128xf32>
    %cst_11 = arith.constant 0.000000e+00 : f32
    %14 = vector.broadcast %cst_11 : f32 to vector<16x128xf32>
    %15 = arith.maximumf %13, %14 : vector<16x128xf32>
    %16 = arith.truncf %15 : vector<16x128xf32> to vector<16x128xbf16>
    %c0_12 = arith.constant 0 : index
    %c0_13 = arith.constant 0 : index
    %17 = vector.load %arg6[%c0_12, %c0_13] : memref<128x128xbf16, #tpu.memory_space<vmem>>, vector<128x128xbf16>
    %cst_14 = arith.constant dense<0.000000e+00> : vector<16x128xf32>
    %18 = tpu.matmul %16, %17, %cst_14 {dimension_numbers = #tpu.dot_dimension_numbers<[1], [0], [0], [1], [0, 0, 1, 1], [], []>} : vector<16x128xbf16>, vector<128x128xbf16>, vector<16x128xf32> -> vector<16x128xf32>
    %c0_15 = arith.constant 0 : index
    %c0_16 = arith.constant 0 : index
    %19 = vector.load %arg7[%c0_15, %c0_16] : memref<1x128xf32, #tpu.memory_space<vmem>>, vector<1x128xf32>
    %20 = vector.broadcast %19 : vector<1x128xf32> to vector<16x128xf32>
    %21 = arith.addf %18, %20 : vector<16x128xf32>
    %c0_17 = arith.constant 0 : index
    %c0_18 = arith.constant 0 : index
    %22 = vector.load %arg9[%c0_17, %c0_18] : memref<16x128xf32, #tpu.memory_space<vmem>>, vector<16x128xf32>
    tpu.vector_store %arg9[%c0_17, %c0_18], %21 {strides = array<i32>} : memref<16x128xf32, #tpu.memory_space<vmem>>, vector<16x128xf32>,
    %cst_19 = arith.constant dense<0xFF800000> : vector<16xf32>
    %23 = vector.multi_reduction <maximumf>, %21, %cst_19 [1] : vector<16x128xf32> to vector<16xf32>
    %24 = vector.shape_cast %23 : vector<16xf32> to vector<16x1xf32>
    %25 = vector.broadcast %24 : vector<16x1xf32> to vector<16x128xf32>
    %26 = arith.subf %21, %25 : vector<16x128xf32>
    %27 = math.exp %26 : vector<16x128xf32>
    %cst_20 = arith.constant dense<0.000000e+00> : vector<16xf32>
    %28 = vector.multi_reduction <add>, %27, %cst_20 [1] : vector<16x128xf32> to vector<16xf32>
    %29 = vector.shape_cast %28 : vector<16xf32> to vector<16x1xf32>
    %30 = tpu.reciprocal %29 {approx = true} : vector<16x1xf32> -> vector<16x1xf32>
    %31 = vector.broadcast %30 : vector<16x1xf32> to vector<16x128xf32>
    %32 = arith.mulf %27, %31 : vector<16x128xf32>
    %c0_21 = arith.constant 0 : index
    %c0_22 = arith.constant 0 : index
    %33 = vector.load %arg8[%c0_21, %c0_22] : memref<16x128xf32, #tpu.memory_space<vmem>>, vector<16x128xf32>
    tpu.vector_store %arg8[%c0_21, %c0_22], %32 {strides = array<i32>} : memref<16x128xf32, #tpu.memory_space<vmem>>, vector<16x128xf32>,
    return
  }
  func.func @transform_0(%arg0: i32) -> (i32, i32) {
    %c0_i32 = arith.constant 0 : i32
    %c0_i32_0 = arith.constant 0 : i32
    return %arg0, %c0_i32 : i32, i32
  }
  func.func @transform_1(%arg0: i32) -> (i32, i32) {
    %c0_i32 = arith.constant 0 : i32
    %c0_i32_0 = arith.constant 0 : i32
    %c0_i32_1 = arith.constant 0 : i32
    return %c0_i32, %c0_i32_0 : i32, i32
  }
  func.func @transform_2(%arg0: i32) -> (i32, i32) {
    %c0_i32 = arith.constant 0 : i32
    %c0_i32_0 = arith.constant 0 : i32
    %c0_i32_1 = arith.constant 0 : i32
    return %c0_i32, %c0_i32_0 : i32, i32
  }
  func.func @transform_3(%arg0: i32) -> (i32, i32) {
    %c0_i32 = arith.constant 0 : i32
    %c0_i32_0 = arith.constant 0 : i32
    %c0_i32_1 = arith.constant 0 : i32
    return %c0_i32, %c0_i32_0 : i32, i32
  }
  func.func @transform_4(%arg0: i32) -> (i32, i32) {
    %c0_i32 = arith.constant 0 : i32
    %c0_i32_0 = arith.constant 0 : i32
    %c0_i32_1 = arith.constant 0 : i32
    return %c0_i32, %c0_i32_0 : i32, i32
  }
  func.func @transform_5(%arg0: i32) -> (i32, i32) {
    %c0_i32 = arith.constant 0 : i32
    %c0_i32_0 = arith.constant 0 : i32
    %c0_i32_1 = arith.constant 0 : i32
    return %c0_i32, %c0_i32_0 : i32, i32
  }
  func.func @transform_6(%arg0: i32) -> (i32, i32) {
    %c0_i32 = arith.constant 0 : i32
    %c0_i32_0 = arith.constant 0 : i32
    %c0_i32_1 = arith.constant 0 : i32
    return %c0_i32, %c0_i32_0 : i32, i32
  }
  func.func @transform_7(%arg0: i32) -> (i32, i32) {
    %c0_i32 = arith.constant 0 : i32
    %c0_i32_0 = arith.constant 0 : i32
    return %arg0, %c0_i32 : i32, i32
  }
  func.func @transform_8(%arg0: i32) -> (i32, i32) {
    %c0_i32 = arith.constant 0 : i32
    %c0_i32_0 = arith.constant 0 : i32
    return %arg0, %c0_i32 : i32, i32
  }
}

</mosaic_0001>

<bundles_post_ra>
// kernel: tpu_custom_call.1
= control target key start
LH: loop header
LB: loop body
LE: loop exit
PB: predicated region body
PF: predicated region fallthrough
CT: control target
= control target key end

     0   :  { %14 = vsyncpa [#allocation3], 0  ;;  %s1823_s0 = inlined_call_operand.hbm [shape: bf16[48,128], index: 0, kind: input, shape index: {}]   ;;  %s1824_s1 = inlined_call_operand.hbm [shape: bf16[128,128], index: 1, kind: input, shape index: {}]   ;;  %s1825_s2 = inlined_call_operand.vmem [shape: f32[1,128], index: 2, kind: input, shape index: {}]   ;;  %s1826_s3 = inlined_call_operand.hbm [shape: bf16[128,128], index: 3, kind: input, shape index: {}]   ;;  %s1827_s4 = inlined_call_operand.vmem [shape: f32[1,128], index: 4, kind: input, shape index: {}]   ;;  %s1828_s5 = inlined_call_operand.hbm [shape: bf16[128,128], index: 5, kind: input, shape index: {}]   ;;  %s1829_s6 = inlined_call_operand.vmem [shape: f32[1,128], index: 6, kind: input, shape index: {}]   ;;  %s1830_s7 = inlined_call_operand.hbm [shape: f32[48,128], index: 7, kind: output, shape index: {0}]   ;;  %s1831_s8 = inlined_call_operand.hbm [shape: f32[48,128], index: 8, kind: output, shape index: {1}]  }
   0x1   :  { %16 = vsyncpa [#allocation3 + $0x1], 0 }
   0x2   :  { %17 = vsyncpa [#allocation6], 0 }
   0x3   :  { %18 = vsyncpa [#allocation9], 0 }
   0x4   :  { %19 = vsyncpa [#allocation4], 0 }
   0x5   :  { %21 = vsyncpa [#allocation4 + $0x1], 0 }
   0x6   :  { %22 = vsyncpa [#allocation12], 0 }
   0x7   :  { %24 = vsyncpa [#allocation12 + $0x1], 0  ;;  %s1466_s27 = smov 0   ;;  %s1468_s28 = smov 0  }
   0x8   :  { %s1470_s29 = smov 0   ;;  %s1472_s30 = smov 0  }
   0x9 LB: > { %1837 = sst [smem:[#allocation18_spill]] %s1395_s27  ;;  %s1487_s9 = sadd.s32 4294967295, %s1407_s30   ;;  %s1407_s30 = sphi %s1472_s30, %s1859_s30   ;;  %s1403_s29 = sphi %s1470_s29, %s1858_s29   ;;  %s1399_s28 = sphi %s1468_s28, %s1857_s28   ;;  %s1395_s27 = sphi %s1466_s27, %s1856_s27  }
   0xa   : > { %s924_s10 = sadd.s32 4294967294, %s1407_s30   ;;  %p50_p0 = scmp.ne.s32.totalorder %s1399_s28, %s1395_s27 }
   0xb   : > { %p1832_p1 = scmp.eq.s32.totalorder %s1487_s9, 0  ;;  %p206_p3 = scmp.eq.s32.totalorder %s924_s10, 2 }
   0xc   : > { %p925_p5 = scmp.ge.s32.totalorder %s1407_s30, 1  ;;  %p239_p7 = scmp.lt.s32.totalorder %s1407_s30, 4 }
   0xd   : > { %p1496_p4 = por %p1832_p1, %p50_p0  ;;  %p1501_p6 = por %p206_p3, %p50_p0 }
   0xe   : > { %p1506_p8 = pnand %p925_p5, %p239_p7  ;;  %s1409_s14 = smov [#allocation5]  }
   0xf   : > { %s1838_s11 = scalar_select %p1496_p4, 1, 0 }
  0x10   : > { %s1839_s12 = scalar_select %p1501_p6, 1, 0 }
  0x11   : > { %s1841_s13 = scalar_select %p1506_p8, 1, 0 }
  0x12   : > { %1840 = sst [smem:[#allocation19_spill]] %s1839_s12  ;;  %s251_s15 = sshll.u32 %s1409_s14, 4  ;;  %s1510_s15 = int_to_ptr.vmem [resolvable:$true] %s251_s15 }
  0x13   : > { %p1084_p9 = pneg %p1506_p8  ;;  %s1410_s17 = smov [#allocation7]  }
  0x14   : > { %s267_s18 = sshll.u32 %s1410_s17, 4  ;;  %s1411_s19 = smov [#allocation8]   ;;  %s1520_s18 = int_to_ptr.vmem [resolvable:$true] %s267_s18 }
  0x15   : > { %p1516_p10 = pnand %p1084_p9, %p1832_p1  ;;  %s1522_s20 = sshll.u32 %s1411_s19, 4  ;;  %s284_s20 = int_to_ptr.vmem [resolvable:$true] %s1522_s20 }
  0x16   : > { %s1187_s23 = scalar_lea.hbm %s1824_s1, 1024 }
  0x17   : > { %p1188_p11 = scmp.ne.s32.totalorder %s1824_s1, %s1187_s23  ;;  %p1532_p12 = pneg %p1516_p10 }
  0x18   : > { %p1194_p3 = scmp.lt.u32.totalorder %s1187_s23, %s1824_s1 }
  0x19   : > { %p1190_p13 = pnand %p1532_p12, %p1188_p11 }
  0x1b   : > { %p1191_p0 = pneg %p1190_p13 }
  0x1d   : > { %p1196_p5 = pnand %p1194_p3, %p1191_p0 }
  0x1f   : > { %1199 = shalt.err (!%p1196_p5)
}
  0x20   : > { %s1200_s17 = scalar_lea.vmem %s1510_s15, 1024  ;;  %p1208_p2 = scmp.lt.s32.totalorder %s1510_s15, %s1510_s15 }
  0x21   : > { %p1201_p7 = scmp.ne.s32.totalorder %s1510_s15, %s1200_s17  ;;  %p1209_p6 = scmp.lt.s32.totalorder %s1200_s17, %s1200_s17 }
  0x23   : > { %p1203_p9 = pnand %p1201_p7, %p1532_p12  ;;  %p1210_p11 = por %p1209_p6, %p1208_p2 }
  0x25   : > { %p1204_p1 = pneg %p1203_p9 }
  0x27   : > { %p1211_p13 = pnand %p1210_p11, %p1204_p1 }
  0x29   : > { %1214 = shalt.err (!%p1211_p13)
}
  0x2a   : > { %s1412_s19 = smov 64   ;;  %s1413_s21 = smov 4  }
  0x2b   : > { %1087 = dma.hbm_to_vmem [thread:$0]  (!%p1516_p10), %s1824_s1, 1024, %s1510_s15, [#allocation6], %s1412_s19, %s1412_s19, %s1413_s21  }
  0x2c   : > { %s1215_s10 = scalar_lea.hbm %s1826_s3, 1024 }
  0x2d   : > { %p1216_p1 = scmp.ne.s32.totalorder %s1826_s3, %s1215_s10  ;;  %p1222_p0 = scmp.lt.u32.totalorder %s1215_s10, %s1826_s3 }
  0x2f   : > { %p1218_p2 = pnand %p1216_p1, %p1532_p12 }
  0x31   : > { %p1219_p6 = pneg %p1218_p2 }
  0x33   : > { %p1224_p3 = pnand %p1222_p0, %p1219_p6 }
  0x35   : > { %1227 = shalt.err (!%p1224_p3)
}
  0x36   : > { %s1228_s15 = scalar_lea.vmem %s1520_s18, 1024  ;;  %p1236_p11 = scmp.lt.s32.totalorder %s1520_s18, %s1520_s18 }
  0x37   : > { %p1229_p5 = scmp.ne.s32.totalorder %s1520_s18, %s1228_s15  ;;  %p1237_p13 = scmp.lt.s32.totalorder %s1228_s15, %s1228_s15 }
  0x39   : > { %p1231_p7 = pnand %p1229_p5, %p1532_p12  ;;  %p1238_p1 = por %p1237_p13, %p1236_p11 }
  0x3b   : > { %p1232_p9 = pneg %p1231_p7 }
  0x3d   : > { %p1239_p2 = pnand %p1238_p1, %p1232_p9 }
  0x3f   : > { %1242 = shalt.err (!%p1239_p2)
}
  0x40   : > { %1090 = dma.hbm_to_vmem [thread:$0]  (!%p1516_p10), %s1826_s3, 1024, %s1520_s18, [#allocation6], %s1412_s19, %s1412_s19, %s1413_s21  }
  0x41   : > { %s1243_s24 = scalar_lea.hbm %s1828_s5, 1024 }
  0x42   : > { %p1244_p6 = scmp.ne.s32.totalorder %s1828_s5, %s1243_s24  ;;  %p1250_p5 = scmp.lt.u32.totalorder %s1243_s24, %s1828_s5 }
  0x44   : > { %p1246_p0 = pnand %p1244_p6, %p1532_p12 }
  0x46   : > { %p1247_p3 = pneg %p1246_p0 }
  0x48   : > { %p1252_p7 = pnand %p1250_p5, %p1247_p3 }
  0x4a   : > { %1255 = shalt.err (!%p1252_p7)
}
  0x4b   : > { %s1256_s15 = scalar_lea.vmem %s284_s20, 1024  ;;  %p1264_p1 = scmp.lt.s32.totalorder %s284_s20, %s284_s20 }
  0x4c   : > { %p1257_p9 = scmp.ne.s32.totalorder %s284_s20, %s1256_s15  ;;  %p1265_p2 = scmp.lt.s32.totalorder %s1256_s15, %s1256_s15 }
  0x4e   : > { %p1259_p11 = pnand %p1257_p9, %p1532_p12  ;;  %p1266_p4 = por %p1265_p2, %p1264_p1 }
  0x50   : > { %p1260_p13 = pneg %p1259_p11 }
  0x52   : > { %p1267_p8 = pnand %p1266_p4, %p1260_p13 }
  0x54   : > { %1270 = shalt.err (!%p1267_p8)
}
  0x55   : > { %1093 = dma.hbm_to_vmem [thread:$0]  (!%p1516_p10), %s1828_s5, 1024, %s284_s20, [#allocation9], %s1412_s19, %s1412_s19, %s1413_s21  }
  0x56   : > { %s1605_s26 = sadd.s32 1, %s1407_s30   ;;  %s37_s12 = sadd.s32 1, %s1403_s29 }
  0x57   : > { %s34_s16 = ssub.s32 %s1407_s30, %s1605_s26  ;;  %p44_p8 = scmp.ne.s32.totalorder %s1403_s29, %s1399_s28 }
  0x58   : > { %p35_p4 = scmp.eq.s32.totalorder %s34_s16, 0  ;;  %p45_p12 = scmp.eq.s32.totalorder %s1407_s30, 0 }
  0x59   : > { %p1108_p6 = scmp.lt.s32.totalorder %s1407_s30, 3  ;;  %p1844_p3 = scmp.eq.s32.totalorder %s1487_s9, 2 }
  0x5a   : > { %s1615_s22 = scalar_select %p35_p4, %s1403_s29, %s37_s12  }
  0x5b   : > { %p46_p0 = por %p45_p12, %p44_p8  ;;  %p1619_p5 = por %p1844_p3, %p44_p8 }
  0x5c   : > { %s300_s24 = sand.u32 1, %s1403_s29   ;;  %s976_s25 = sshll.u32 %s1407_s30, 7 }
  0x5d   : > { %s930_s20 = sshll.u32 %s300_s24, 3  ;;  %s1628_s17 = scalar_lea.hbm %s1823_s0, %s976_s25 }
  0x5e   : > { %s304_s15 = scalar_lea.vmem [#allocation2], %s930_s20  ;;  %p1630_p10 = pnand %p1108_p6, %p46_p0 }
  0x5f   : > { %s311_s18 = sshll.u32 %s304_s15, 4  ;;  %s1636_s16 = scalar_lea.sflag [#allocation3], %s300_s24  ;;  %s1634_s18 = int_to_ptr.vmem [resolvable:$true] %s311_s18 }
  0x60   : > { %s1271_s12 = scalar_lea.hbm %s1628_s17, 128  ;;  %p1273_p9 = pneg %p1630_p10 }
  0x61   : > { %p1272_p7 = scmp.ne.s32.totalorder %s1628_s17, %s1271_s12  ;;  %s1276_s10 = scalar_lea.hbm %s1823_s0, 384 }
  0x62   : > { %p1277_p1 = scmp.lt.u32.totalorder %s1628_s17, %s1823_s0  ;;  %p1278_p2 = scmp.lt.u32.totalorder %s1276_s10, %s1271_s12 }
  0x63   : > { %p1274_p11 = pnand %p1273_p9, %p1272_p7  ;;  %p1280_p8 = scmp.lt.u32.totalorder %s1271_s12, %s1628_s17 }
  0x64   : > { %p1279_p4 = por %p1278_p2, %p1277_p1 }
  0x65   : > { %p1275_p13 = pneg %p1274_p11 }
  0x66   : > { %p1281_p12 = por %p1280_p8, %p1279_p4 }
  0x68   : > { %p1282_p6 = pnand %p1281_p12, %p1275_p13 }
  0x6a   : > { %1285 = shalt.err (!%p1282_p6)
}
  0x6b   : > { %s1286_s24 = scalar_lea.vmem %s1634_s18, 128  ;;  %s1414_s25 = smov [#allocation2]  }
  0x6c   : > { %p1287_p0 = scmp.ne.s32.totalorder %s1634_s18, %s1286_s24  ;;  %s1291_s20 = sshll.u32 %s1414_s25, 4  ;;  %s1292_s20 = int_to_ptr.vmem [resolvable:$false] %s1291_s20 }
  0x6d   : > { %s1293_s14 = scalar_lea.vmem %s1292_s20, 256  ;;  %p1294_p11 = scmp.lt.s32.totalorder %s1634_s18, %s1292_s20 }
  0x6e   : > { %p1289_p3 = pnand %p1287_p0, %p1273_p9  ;;  %p1295_p1 = scmp.lt.s32.totalorder %s1293_s14, %s1286_s24 }
  0x70   : > { %p1290_p7 = pneg %p1289_p3  ;;  %p1296_p2 = por %p1295_p1, %p1294_p11 }
  0x72   : > { %p1297_p4 = pnand %p1296_p2, %p1290_p7 }
  0x74   : > { %1300 = shalt.err (!%p1297_p4)
}
  0x75   : > { %1097 = dma.hbm_to_vmem [thread:$0]  (!%p1630_p10), %s1628_s17, 128, %s1634_s18, %s1636_s16, %s1412_s19, %s1412_s19, %s1413_s21  }
  0x76   : > { %p1847_p9 = scmp.ne.s32.totalorder %s1841_s13, 0 }
  0x77   : > { %s1670_s12 = sand.u32 (!%p1847_p9), 1, %s1399_s28   ;;  %p1848_p13 = scmp.ne.s32.totalorder (!%p1847_p9), %s1838_s11, 0 }
  0x78   : > { %323 = sbr.rel (%p1847_p9) target bundleno = 1153 (0x481), region = 48  ;;  %s934_s10 = sshll.u32 (!%p1847_p9), %s1670_s12, 3 }
  0x79   : > { %s326_s15 = scalar_lea.sflag (!%p1847_p9), [#allocation3], %s1670_s12  ;;  %s1674_s24 = scalar_lea.vmem (!%p1847_p9), [#allocation2], %s934_s10 }
  0x7f   : > { %1374 = dma.done.wait (%p1848_p13), %s326_s15, 128  }
  0x80   : > { %1376 = vsyncadd (%p1848_p13), %s326_s15, 4294967168  ;;  %p1849_p10 = scmp.eq.s32.totalorder %s1487_s9, 0 }
  0x82   : > { %1378 = dma.done.wait (%p1849_p10), [#allocation6], 2048   ;;  %p1850_p8 = pmov %p1849_p10 }
  0x84   : > { %1380 = vsyncadd (%p1850_p8), [#allocation6], 4294965248  ;;  %p1851_p12 = pmov %p1850_p8 }
  0x85   : > { %p1852_p6 = pmov %p1850_p8 }
  0x86   : > { %1382 = dma.done.wait (%p1851_p12), [#allocation9], 1024  }
  0x87   : > { %1384 = vsyncadd (%p1852_p6), [#allocation9], 4294966272  ;;  %v1415_v0 = vmov 0.0   ;;  %vm1416_vm0 = vmmov 0   ;;  %v1154_v1 = vld [vmem:[#allocation5] sm:$0xff]   ;;  %v1155_v2 = vld [vmem:[#allocation5 + $0x8] sm:$0xff]  }
  0x88   : > { %1006 = vmatprep.subr.bf16.mxu0 %v1415_v0  ;;  %1022 = vmatprep.mubr.msk.bf16.mxu0 %vm1416_vm0, %v1415_v0  ;;  %v1156_v3 = vld [vmem:[#allocation5 + $0x10] sm:$0xff]   ;;  %v1163_v4 = vld [vmem:[#allocation7] sm:$0xff]   ;;  %v1157_v5 = vld [vmem:[#allocation5 + $0x18] sm:$0xff]   ;;  %s938_s17 = sshll.u32 %s1670_s12, 4  ;;  %s977_s20 = sshll.u32 %s1487_s9, 8 }
  0x89   : > { %1026 = vmatprep.subr.bf16.mxu1 %v1415_v0  ;;  %1042 = vmatprep.mubr.msk.bf16.mxu1 %vm1416_vm0, %v1415_v0  ;;  %v1164_v6 = vld [vmem:[#allocation7 + $0x8] sm:$0xff]   ;;  %v1158_v7 = vld [vmem:[#allocation5 + $0x20] sm:$0xff]   ;;  %v1165_v8 = vld [vmem:[#allocation7 + $0x10] sm:$0xff]   ;;  %s378_s16 = scalar_lea.vmem [#allocation11], %s938_s17  ;;  %s1739_s15 = scalar_lea.hbm %s1831_s8, %s977_s20 }
  0x8a   : > { %1007 = vmatpush3.bf16.msra.mxu0 %v1154_v1  ;;  %1027 = vmatpush3.bf16.msra.mxu1 %v1163_v4  ;;  %v1159_v9 = vld [vmem:[#allocation5 + $0x28] sm:$0xff]   ;;  %v1166_v10 = vld [vmem:[#allocation7 + $0x18] sm:$0xff]   ;;  %v1160_v11 = vld [vmem:[#allocation5 + $0x30] sm:$0xff]   ;;  %s790_s25 = sshll.u32 %s378_s16, 4  ;;  %s1417_s13 = smov [#allocation11]   ;;  %s1732_s25 = int_to_ptr.vmem [resolvable:$true] %s790_s25 }
  0x8b   : > { %1008 = vmatprep.subr.bf16.mxu0 %v1415_v0  ;;  %1028 = vmatprep.subr.bf16.mxu1 %v1415_v0  ;;  %v1167_v12 = vld [vmem:[#allocation7 + $0x20] sm:$0xff]   ;;  %v1161_v13 = vld [vmem:[#allocation5 + $0x38] sm:$0xff]   ;;  %v1168_v14 = vld [vmem:[#allocation7 + $0x28] sm:$0xff]   ;;  %s1301_s11 = scalar_lea.vmem %s1732_s25, 256  ;;  %s1305_s19 = sshll.u32 %s1417_s13, 4  ;;  %s1306_s19 = int_to_ptr.vmem [resolvable:$false] %s1305_s19 }
  0x8c   : > { %v1162_v15 = vld [vmem:[%s1674_s24] sm:$0xff]   ;;  %v1171_v18 = vld [vmem:[#allocation8] sm:$0xff]   ;;  %v1172_v19 = vld [vmem:[#allocation8 + $0x8] sm:$0xff]   ;;  %s761_s24 = scalar_lea.sflag [#allocation12], %s1670_s12  ;;  %p1302_p0 = scmp.ne.s32.totalorder %s1732_s25, %s1301_s11 }
  0x8d   : > { %v1169_v16 = vld [vmem:[#allocation7 + $0x30] sm:$0xff]   ;;  %v1170_v17 = vld [vmem:[#allocation7 + $0x38] sm:$0xff]   ;;  %v1175_v22 = vld [vmem:[#allocation8 + $0x20] sm:$0xff]   ;;  %s1307_s21 = scalar_lea.vmem %s1306_s19, 512  ;;  %p1308_p11 = scmp.lt.s32.totalorder %s1732_s25, %s1306_s19 }
  0x8e   : > { %1009 = vmatpush3.bf16.msra.mxu0 %v1155_v2  ;;  %1029 = vmatpush3.bf16.msra.mxu1 %v1164_v6  ;;  %v1173_v20 = vld [vmem:[#allocation8 + $0x10] sm:$0xff]   ;;  %v1174_v21 = vld [vmem:[#allocation8 + $0x18] sm:$0xff]   ;;  %v1176_v23 = vld [vmem:[#allocation8 + $0x28] sm:$0xff]   ;;  %p1303_p3 = pnand %p1302_p0, %p1619_p5  ;;  %p1309_p1 = scmp.lt.s32.totalorder %s1307_s21, %s1301_s11 }
  0x8f   : > { %1010 = vmatprep.subr.bf16.mxu0 %v1415_v0  ;;  %1030 = vmatprep.subr.bf16.mxu1 %v1415_v0  ;;  %v940_v24 = vld [vmem:[%s1825_s2] ss:$0 sm:$0xff]  ;;  %v1178_v35 = vld [vmem:[#allocation8 + $0x38] sm:$0xff]  }
  0x90   : > { %v1177_v34 = vld [vmem:[#allocation8 + $0x30] sm:$0xff]   ;;  %p1304_p7 = pneg %p1303_p3  ;;  %p1310_p2 = por %p1309_p1, %p1308_p11 }
  0x91   : > { %v950_v36 = vld [vmem:[%s1827_s4] ss:$0 sm:$0xff] }
  0x92   : > { %1011 = vmatpush3.bf16.msra.mxu0 %v1156_v3  ;;  %1031 = vmatpush3.bf16.msra.mxu1 %v1165_v8  ;;  %v959_v46 = vld [vmem:[%s1829_s6] ss:$0 sm:$0xff]  ;;  %p1311_p4 = pnand %p1310_p2, %p1304_p7 }
  0x93   : > { %1012 = vmatprep.subr.bf16.mxu0 %v1415_v0  ;;  %1032 = vmatprep.subr.bf16.mxu1 %v1415_v0 }
  0x96   : > { %1013 = vmatpush3.bf16.msra.mxu0 %v1157_v5  ;;  %1033 = vmatpush3.bf16.msra.mxu1 %v1166_v10 }
  0x97   : > { %1014 = vmatprep.subr.bf16.mxu0 %v1415_v0  ;;  %1034 = vmatprep.subr.bf16.mxu1 %v1415_v0 }
  0x9a   : > { %1015 = vmatpush3.bf16.msra.mxu0 %v1158_v7  ;;  %1035 = vmatpush3.bf16.msra.mxu1 %v1167_v12 }
  0x9b   : > { %1016 = vmatprep.subr.bf16.mxu0 %v1415_v0  ;;  %1036 = vmatprep.subr.bf16.mxu1 %v1415_v0 }
  0x9e   : > { %1017 = vmatpush3.bf16.msra.mxu0 %v1159_v9  ;;  %1037 = vmatpush3.bf16.msra.mxu1 %v1168_v14 }
  0x9f   : > { %1018 = vmatprep.subr.bf16.mxu0 %v1415_v0  ;;  %1038 = vmatprep.subr.bf16.mxu1 %v1415_v0 }
  0xa2   : > { %1019 = vmatpush3.bf16.msra.mxu0 %v1160_v11  ;;  %1039 = vmatpush3.bf16.msra.mxu1 %v1169_v16 }
  0xa3   : > { %1020 = vmatprep.subr.bf16.mxu0 %v1415_v0  ;;  %1040 = vmatprep.subr.bf16.mxu1 %v1415_v0 }
  0xa6   : > { %1021 = vmatpush3.bf16.msra.mxu0 %v1161_v13  ;;  %1041 = vmatpush3.bf16.msra.mxu1 %v1170_v17 }
  0xa7   : > { %1046 = vmatprep.subr.bf16.mxu0 %v1415_v0 }
  0xa9   : > { %1023 = vmatmul.mubr.bf16.vlgmr.msra.gmra.mrb[0].mxu0 %v1162_v15 }
  0xaa   : > { %1062 = vmatprep.mubr.msk.bf16.mxu0 %vm1416_vm0, %v1415_v0  ;;  %1047 = vmatpush3.bf16.msra.mxu0 %v1171_v18 }
  0xab   : > { %1048 = vmatprep.subr.bf16.mxu0 %v1415_v0 }
  0xae   : > { %1049 = vmatpush3.bf16.msra.mxu0 %v1172_v19 }
  0xaf   : > { %1050 = vmatprep.subr.bf16.mxu0 %v1415_v0 }
  0xb2   : > { %1051 = vmatpush3.bf16.msra.mxu0 %v1173_v20 }
  0xb3   : > { %1052 = vmatprep.subr.bf16.mxu0 %v1415_v0 }
  0xb6   : > { %1053 = vmatpush3.bf16.msra.mxu0 %v1174_v21 }
  0xb7   : > { %1054 = vmatprep.subr.bf16.mxu0 %v1415_v0 }
  0xba   : > { %1055 = vmatpush3.bf16.msra.mxu0 %v1175_v22 }
  0xbb   : > { %1056 = vmatprep.subr.bf16.mxu0 %v1415_v0 }
  0xbe   : > { %1057 = vmatpush3.bf16.msra.mxu0 %v1176_v23 }
  0xbf   : > { %1058 = vmatprep.subr.bf16.mxu0 %v1415_v0 }
  0xc2   : > { %1059 = vmatpush3.bf16.msra.mxu0 %v1177_v34 }
  0xc3   : > { %1060 = vmatprep.subr.bf16.mxu0 %v1415_v0 }
  0xc6   : > { %1061 = vmatpush3.bf16.msra.mxu0 %v1178_v35 }
 0x17c   : > { %v496_v25 = vpop.f32.mrb[0].mxu0 }
 0x17d   : > { %v497_v26 = vadd.f32 %v940_v24, %v496_v25  ;;  %v1024_v27 = vpop.f32.mrb[1].mxu0 }
 0x17e   : > { %v499_v28 = vpop.f32.mrb[2].mxu0 }
 0x17f   : > { %v500_v29 = vadd.f32 %v940_v24, %v499_v28  ;;  %v1025_v30 = vpop.f32.mrb[3].mxu0  ;;  %v503_v31 = vmax.f32 %v497_v26, 0.0 }
 0x181   : > { %v504_v32 = vmax.f32 %v500_v29, 0.0 }
 0x183   : > { %v505_v33 = vpack.c.bf16 %v504_v32, %v503_v31 }
 0x185   : > { %1043 = vmatmul.mubr.bf16.vlgmr.msra.gmra.mrb[0].mxu1 %v505_v33 }
 0x258   : > { %v611_v37 = vpop.f32.mrb[0].mxu1 }
 0x259   : > { %v612_v38 = vadd.f32 %v950_v36, %v611_v37  ;;  %v1044_v39 = vpop.f32.mrb[1].mxu1 }
 0x25a   : > { %v614_v40 = vpop.f32.mrb[2].mxu1 }
 0x25b   : > { %v615_v41 = vadd.f32 %v950_v36, %v614_v40  ;;  %v1045_v42 = vpop.f32.mrb[3].mxu1  ;;  %v618_v43 = vmax.f32 %v612_v38, 0.0 }
 0x25d   : > { %v619_v44 = vmax.f32 %v615_v41, 0.0 }
 0x25f   : > { %v620_v45 = vpack.c.bf16 %v619_v44, %v618_v43 }
 0x261   : > { %1063 = vmatmul.mubr.bf16.vlgmr.msra.gmra.mrb[4].mxu0 %v620_v45 }
 0x334   : > { %v726_v47 = vpop.f32.mrb[4].mxu0 }
 0x335   : > { %v727_v48 = vadd.f32 %v959_v46, %v726_v47  ;;  %v1064_v49 = vpop.f32.mrb[5].mxu0 }
 0x336   : > { %v729_v50 = vpop.f32.mrb[6].mxu0 }
 0x337   : > { %733 = vst [vmem:[%s378_s16] sm:$0xff] %v727_v48  ;;  %v730_v51 = vadd.f32 %v959_v46, %v729_v50  ;;  %735 = vmax.xlane.f32.xlu0 %v727_v48  ;;  %v1065_v52 = vpop.f32.mrb[7].mxu0 }
 0x339   : > { %734 = vst [vmem:[%s378_s16 + $0x8] sm:$0xff] %v730_v51 }
 0x33b   : > { %737 = vmax.xlane.f32.xlu0 %v730_v51 }
 0x3c4   : > { %v736_v53 = vpop.xlane.xlu0 %735 }
 0x3c5   : > { %v739_v54 = vsub.f32 %v727_v48, %v736_v53 }
 0x3c7   : > { %v741_v55 = vmul.f32 1.442695, %v739_v54 }
 0x3c8   : > { %v738_v56 = vpop.xlane.xlu0 %737 }
 0x3c9   : > { %1179 = vpow2.f32 %v741_v55  ;;  %v740_v57 = vsub.f32 %v730_v51, %v738_v56 }
 0x3cb   : > { %v743_v58 = vmul.f32 1.442695, %v740_v57 }
 0x3cd   : > { %1181 = vpow2.f32 %v743_v58 }
 0x3d3   : > { %v1180_v59 = vpop.eup %1179 }
 0x3d4   : > { %745 = vadd.xlane.f32.xlu1 %v1180_v59 }
 0x3d7   : > { %v1182_v60 = vpop.eup %1181 }
 0x3d8   : > { %747 = vadd.xlane.f32.xlu1 %v1182_v60 }
 0x3d9   : > { %1314 = shalt.err (!%p1311_p4)
}
 0x3da   : > { %s1315_s18 = scalar_lea.hbm %s1739_s15, 256  ;;  %s1319_s14 = scalar_lea.hbm %s1831_s8, 768 }
 0x3db   : > { %p1316_p9 = scmp.ne.s32.totalorder %s1739_s15, %s1315_s18  ;;  %p1320_p8 = scmp.lt.u32.totalorder %s1739_s15, %s1831_s8 }
 0x3dc   : > { %p1321_p12 = scmp.lt.u32.totalorder %s1319_s14, %s1315_s18  ;;  %p1323_p0 = scmp.lt.u32.totalorder %s1315_s18, %s1739_s15 }
 0x3dd   : > { %p1317_p13 = pnand %p1316_p9, %p1619_p5 }
 0x3de   : > { %p1322_p6 = por %p1321_p12, %p1320_p8 }
 0x3df   : > { %p1318_p10 = pneg %p1317_p13 }
 0x3e0   : > { %p1324_p3 = por %p1323_p0, %p1322_p6 }
 0x3e2   : > { %p1325_p7 = pnand %p1324_p3, %p1318_p10 }
 0x3e4   : > { %1328 = shalt.err (!%p1325_p7)
}
 0x3e5   : > { %s1418_s11 = smov 128   ;;  %s1419_s19 = smov 8  }
 0x3e6   : > { %1081 = dma.vmem_to_hbm [thread:$0]  (%p1619_p5), %s1732_s25, 256, %s1739_s15, %s761_s24, %s1418_s11, %s1418_s11, %s1419_s19  }
 0x3e7   : > { %s371_s21 = scalar_lea.vmem [#allocation10], %s938_s17  ;;  %s1777_s24 = scalar_lea.hbm %s1830_s7, %s977_s20 }
 0x3e8   : > { %s774_s18 = sshll.u32 %s371_s21, 4  ;;  %s756_s27 = scalar_lea.sflag [#allocation4], %s1670_s12  ;;  %s1770_s18 = int_to_ptr.vmem [resolvable:$true] %s774_s18 }
 0x3e9   : > { %s1329_s16 = scalar_lea.vmem %s1770_s18, 256  ;;  %s1420_s17 = smov [#allocation10]  }
 0x3ea   : > { %p1330_p11 = scmp.ne.s32.totalorder %s1770_s18, %s1329_s16  ;;  %s1333_s14 = sshll.u32 %s1420_s17, 4  ;;  %s1334_s14 = int_to_ptr.vmem [resolvable:$false] %s1333_s14 }
 0x3eb   : > { %s1335_s10 = scalar_lea.vmem %s1334_s14, 512  ;;  %p1336_p4 = scmp.lt.s32.totalorder %s1770_s18, %s1334_s14 }
 0x3ec   : > { %p1331_p1 = pnand %p1330_p11, %p1619_p5  ;;  %p1337_p9 = scmp.lt.s32.totalorder %s1335_s10, %s1329_s16 }
 0x3ee   : > { %p1332_p2 = pneg %p1331_p1  ;;  %p1338_p13 = por %p1337_p9, %p1336_p4 }
 0x3f0   : > { %p1339_p10 = pnand %p1338_p13, %p1332_p2 }
 0x461   : > { %v746_v61 = vpop.xlane.xlu1 %745 }
 0x462   : > { %1183 = vrcp.f32 %v746_v61 }
 0x465   : > { %v748_v62 = vpop.xlane.xlu1 %747 }
 0x466   : > { %1185 = vrcp.f32 %v748_v62 }
 0x46c   : > { %v1184_v63 = vpop.eup %1183 }
 0x46d   : > { %v751_v0 = vmul.f32 %v1184_v63, %v1180_v59 }
 0x46f   : > { %753 = vst [vmem:[%s371_s21] sm:$0xff] %v751_v0 }
 0x470   : > { %v1186_v1 = vpop.eup %1185 }
 0x471   : > { %v752_v2 = vmul.f32 %v1186_v1, %v1182_v60 }
 0x473   : > { %754 = vst [vmem:[%s371_s21 + $0x8] sm:$0xff] %v752_v2 }
 0x474   : > { %1342 = shalt.err (!%p1339_p10)
}
 0x475   : > { %s1343_s9 = scalar_lea.hbm %s1777_s24, 256  ;;  %s1347_s21 = scalar_lea.hbm %s1830_s7, 768 }
 0x476   : > { %p1344_p8 = scmp.ne.s32.totalorder %s1777_s24, %s1343_s9  ;;  %p1348_p0 = scmp.lt.u32.totalorder %s1777_s24, %s1830_s7 }
 0x477   : > { %p1349_p3 = scmp.lt.u32.totalorder %s1347_s21, %s1343_s9  ;;  %p1351_p11 = scmp.lt.u32.totalorder %s1343_s9, %s1777_s24 }
 0x478   : > { %p1345_p12 = pnand %p1344_p8, %p1619_p5 }
 0x479   : > { %p1350_p7 = por %p1349_p3, %p1348_p0 }
 0x47a   : > { %p1346_p6 = pneg %p1345_p12 }
 0x47b   : > { %p1352_p1 = por %p1351_p11, %p1350_p7 }
 0x47d   : > { %p1353_p2 = pnand %p1352_p1, %p1346_p6 }
 0x47f   : > { %1356 = shalt.err (!%p1353_p2)
}
 0x480   : > { %1080 = dma.vmem_to_hbm [thread:$0]  (%p1619_p5), %s1770_s18, 256, %s1777_s24, %s756_s27, %s1418_s11, %s1418_s11, %s1419_s19  }
 0x481 PF: > { %s1853_s16 = sld [smem:[#allocation18_spill]]  ;;  %s1854_s17 = sld [smem:[#allocation19_spill]] }
 0x482   : > { %p1112_p4 = scmp.ge.s32.totalorder %s1407_s30, 2 }
 0x487   : > { %s805_s14 = sand.u32 1, %s1853_s16   ;;  %p1855_p9 = scmp.ne.s32.totalorder %s1854_s17, 0 }
 0x488   : > { %s806_s10 = scalar_lea.sflag [#allocation4], %s805_s14 }
 0x489   : > { %p1099_p13 = pnand %p1112_p4, %p1855_p9 }
 0x48b   : > { %1386 = dma.done.wait (!%p1099_p13), %s806_s10, 256  }
 0x48c   : > { %1388 = vsyncadd (!%p1099_p13), %s806_s10, 4294967040  ;;  %s815_s23 = scalar_lea.sflag [#allocation12], %s805_s14 }
 0x48d   : > { %1390 = dma.done.wait (!%p1099_p13), %s815_s23, 256  }
 0x48e   : > { %1392 = vsyncadd (!%p1099_p13), %s815_s23, 4294967040  ;;  %p27_p5 = scmp.ge.s32.totalorder %s1605_s26, 5   ;;  %s1856_s27 = smov %s1399_s28 }
 0x48f   : > { %s1857_s28 = smov %s1403_s29  ;;  %s1858_s29 = smov %s1615_s22 }
 0x490   : > { %s1859_s30 = smov %s1605_s26  ;;  %29 = sbr.rel (!%p27_p5) target bundleno = 9 (0x9), region = 122 }
 0x497   :  { %820 = vsyncpa [#allocation3], 1 }
 0x498   :  { %822 = vsyncpa [#allocation3 + $0x1], 1 }
 0x499   :  { %823 = vsyncpa [#allocation6], 1 }
 0x49a   :  { %824 = vsyncpa [#allocation9], 1 }
 0x49b   :  { %825 = vsyncpa [#allocation4], 1 }
 0x49c   :  { %827 = vsyncpa [#allocation4 + $0x1], 1 }
 0x49d   :  { %828 = vsyncpa [#allocation12], 1 }
 0x49e   :  { %830 = vsyncpa [#allocation12 + $0x1], 1 }

</bundles_post_ra>
